<compile_context>
chip_gen: v7x
topology: tpu7x:2x2x1
jax: 0.10.0
libtpu: 0.0.40
codegen_flags: <defaults>
</compile_context>

<pallas_src>
import functools

import jax
import jax.numpy as jnp
from jax import lax
from jax.experimental import pallas as pl
from jax.experimental.pallas import tpu as pltpu


def _round_up(x, m):
    return ((x + m - 1) // m) * m


# --------------------------------------------------------------------------- #
# Fused BasicBlock Pallas kernel (channel-major: sublane = cout, lane = rows)  #
# --------------------------------------------------------------------------- #
def _basic_block_kernel(p_ref, w1s_ref, b1_ref, w2s_ref, b2s_ref, o_ref, scr_ref,
                        *, cout, kh, kw, Ho, Wo, Wv, pad):
    rows = Ho * Wv
    scr_cols = scr_ref.shape[1]

    # ---- conv1 (+ folded BN1) and the 1x1 shortcut in ONE MXU matmul ---------
    # w1s = [ w1*s1 ; centre-tap-expanded shortcut ]  -> (2*cout, K1) bf16
    ys = jnp.dot(w1s_ref[...], p_ref[...], preferred_element_type=jnp.float32)
    y = jnp.maximum(ys[:cout, :] + b1_ref[...], 0.0)            # (cout, rows) f32
    acc = ys[cout:, :] + b2s_ref[...]                           # shortcut + biases

    # Zero the virtual-width pad columns (their patches are zero, so y there is
    # relu(b1) != 0; conv2 halo windows must read zeros at those positions).
    if Wv > Wo:
        lane = lax.broadcasted_iota(jnp.int32, (cout, rows), 1)
        y = jnp.where(lane % Wv < Wo, y, 0.0)

    # ---- stage y into the flattened zero-halo scratch ------------------------
    # scratch lane h*Wv + w  <->  spatially padded y[h - pad, w - pad]
    off0 = pad * Wv + pad
    tail = scr_cols - off0 - rows
    if off0 > 0:
        scr_ref[:, :off0] = jnp.zeros((cout, off0), scr_ref.dtype)
    if tail > 0:
        scr_ref[:, off0 + rows:scr_cols] = jnp.zeros((cout, tail), scr_ref.dtype)
    scr_ref[:, off0:off0 + rows] = y

    # ---- conv2 as ONE K = kh*kw*cout matmul + residual + ReLU ----------------
    # tap (di, dj) is the contiguous lane window [di*Wv + dj, +rows) of the
    # scratch; stack the kh*kw windows along sublanes, cast to bf16 once.
    # (scratch kept f32 so the sublane concat pieces stay 8-row aligned.)
    wins = jnp.concatenate(
        [scr_ref[:, (t // kw) * Wv + (t % kw):(t // kw) * Wv + (t % kw) + rows]
         for t in range(kh * kw)], axis=0)                      # (kh*kw*cout, rows)
    acc = acc + jnp.dot(w2s_ref[...], wins.astype(jnp.bfloat16),
                        preferred_element_type=jnp.float32)

    o_ref[...] = jnp.maximum(acc, 0.0).astype(o_ref.dtype)


# --------------------------------------------------------------------------- #
# Wrapper: channel-major bf16 im2col, BN/weight folding, pallas_call           #
# --------------------------------------------------------------------------- #
def _im2col_cm(x_nchw, kh, kw, stride, pad, Ho, Wo, Wv):
    """Channel-major bf16 im2col: (N, kh*kw*C, Ho*Wv); lanes with ow >= Wo are zero."""
    x = x_nchw.astype(jnp.bfloat16)
    N, C, H, W = x.shape
    xp = jnp.pad(x, ((0, 0), (0, 0), (pad, pad), (pad, pad)))
    taps = [xp[:, :, i:i + (Ho - 1) * stride + 1:stride,
                     j:j + (Wo - 1) * stride + 1:stride]
            for i in range(kh) for j in range(kw)]              # each (N, C, Ho, Wo)
    p = jnp.stack(taps, axis=1).reshape(N, kh * kw * C, Ho, Wo)
    p = jnp.pad(p, ((0, 0), (0, 0), (0, 0), (0, Wv - Wo)))
    return p.reshape(N, kh * kw * C, Ho * Wv)


def _fold_block_params(p):
    """Fold BN into channel-major bf16 weights + f32 biases; expand the 1x1
    shortcut into the centre-tap columns of the fused conv1 weight."""
    kh, kw, cin, cout = p["w1"].shape
    K1 = kh * kw * cin
    tc = (kh // 2) * kw + (kw // 2)
    w1 = (p["w1"] * p["s1"]).transpose(3, 0, 1, 2).reshape(cout, K1)
    if p["use_sc"]:
        wsc = (p["wsc"][0, 0] * p["ssc"]).T                      # (cout, cin)
        bsc = p["bsc"]
    else:
        wsc = jnp.eye(cout, cin, dtype=jnp.float32)              # identity shortcut
        bsc = jnp.zeros((cout,), jnp.float32)
    wsc_full = jnp.zeros((cout, K1), jnp.float32)
    wsc_full = wsc_full.at[:, tc * cin:(tc + 1) * cin].set(wsc)
    w2 = (p["w2"] * p["s2"]).transpose(3, 0, 1, 2).reshape(cout, kh * kw * cout)
    return {
        "w1s": jnp.concatenate([w1, wsc_full], axis=0).astype(jnp.bfloat16),
        "b1": p["b1"].reshape(cout, 1).astype(jnp.float32),
        "w2s": w2.astype(jnp.bfloat16),
        "b2s": (p["b2"] + bsc).reshape(cout, 1).astype(jnp.float32),
    }


def basic_block_pallas(x_nchw, p, stride):
    kh, kw, cin, cout = p["w1"].shape
    pad = kh // 2
    N, _, H, W = x_nchw.shape
    Ho = (H + 2 * pad - kh) // stride + 1
    Wo = (W + 2 * pad - kw) // stride + 1
    Wv = _round_up(Wo + kw - 1, 8)       # virtual width: taps -> contiguous lanes
    rows = Ho * Wv
    K1 = kh * kw * cin
    scr_cols = (Ho + kh - 1) * Wv + (kw - 1)   # exactly covers every tap window

    f = _fold_block_params(p)
    patches = _im2col_cm(x_nchw, kh, kw, stride, pad, Ho, Wo, Wv)

    kernel = functools.partial(_basic_block_kernel, cout=cout, kh=kh, kw=kw,
                               Ho=Ho, Wo=Wo, Wv=Wv, pad=pad)

    out = pl.pallas_call(
        kernel,
        out_shape=jax.ShapeDtypeStruct((N, cout, rows), jnp.bfloat16),
        grid=(N,),
        in_specs=[
            pl.BlockSpec((None, K1, rows), lambda i: (i, 0, 0)),
            pl.BlockSpec((2 * cout, K1), lambda i: (0, 0)),
            pl.BlockSpec((cout, 1), lambda i: (0, 0)),
            pl.BlockSpec((cout, kh * kw * cout), lambda i: (0, 0)),
            pl.BlockSpec((cout, 1), lambda i: (0, 0)),
        ],
        out_specs=pl.BlockSpec((None, cout, rows), lambda i: (i, 0, 0)),
        scratch_shapes=[pltpu.VMEM((cout, scr_cols), jnp.float32)],
        compiler_params=pltpu.CompilerParams(
            dimension_semantics=("parallel",)),
    )(patches, f["w1s"], f["b1"], f["w2s"], f["b2s"])

    # lane-dense channel-major slab -> NCHW, dropping the virtual-pad columns.
    return out.reshape(N, cout, Ho, Wv)[:, :, :, :Wo]


def cand_basic_block_forward(x_nchw, params_list, stride):
    x = x_nchw
    for p in params_list:
        x = basic_block_pallas(x, p, stride)     # bf16 NCHW between blocks
    return x.astype(jnp.float32)


# --------------------------------------------------------------------------- #
# Parameter construction (deterministic, synthetic)                            #
# --------------------------------------------------------------------------- #
def _fold_bn(gamma, beta, mean, var, eps=1e-5):
    scale = gamma / jnp.sqrt(var + eps)
    bias = beta - mean * scale
    return scale, bias


def _init_bn(key, c):
    k0, k1, k2, k3 = jax.random.split(key, 4)
    gamma = 1.0 + 0.1 * jax.random.normal(k0, (c,), jnp.float32)
    beta = 0.1 * jax.random.normal(k1, (c,), jnp.float32)
    mean = 0.1 * jax.random.normal(k2, (c,), jnp.float32)
    var = jnp.abs(jax.random.normal(k3, (c,), jnp.float32)) + 0.5
    return _fold_bn(gamma, beta, mean, var)


def init_basic_block(key, cin, cout, ksize, stride):
    keys = jax.random.split(key, 6)
    p = {}
    p["w1"] = 0.1 * jax.random.normal(keys[0], (ksize, ksize, cin, cout), jnp.float32)
    p["s1"], p["b1"] = _init_bn(keys[1], cout)
    p["w2"] = 0.1 * jax.random.normal(keys[2], (ksize, ksize, cout, cout), jnp.float32)
    p["s2"], p["b2"] = _init_bn(keys[3], cout)
    p["use_sc"] = (stride != 1) or (cin != cout)
    if p["use_sc"]:
        p["wsc"] = 0.1 * jax.random.normal(keys[4], (1, 1, cin, cout), jnp.float32)
        p["ssc"], p["bsc"] = _init_bn(keys[5], cout)
    return p


def init_cand_basic_block(key, cin, cout, ksize, stride, num_conv):
    assert num_conv in (1, 2, 3), "num_conv must be 1, 2 or 3!"
    keys = jax.random.split(key, num_conv)
    params = [init_basic_block(keys[0], cin, cout, ksize, stride)]
    for i in range(1, num_conv):
        params.append(init_basic_block(keys[i], cout, cout, ksize, stride))
    return params


# --------------------------------------------------------------------------- #
# Pure-JAX reference (mirrors the bf16 operand / activation rounding)           #
# --------------------------------------------------------------------------- #
def _ref_conv(x_nchw, w_hwio_bf16, stride, pad):
    return lax.conv_general_dilated(
        x_nchw.astype(jnp.bfloat16), w_hwio_bf16,
        window_strides=(stride, stride),
        padding=((pad, pad), (pad, pad)),
        dimension_numbers=("NCHW", "HWIO", "NCHW"),
        preferred_element_type=jnp.float32)


def _ref_forward(x_nchw, params_list, stride):
    x = x_nchw
    for p in params_list:
        pad = p["w1"].shape[0] // 2
        b = lambda v: v.reshape(1, -1, 1, 1)
        w1 = (p["w1"] * p["s1"]).astype(jnp.bfloat16)
        w2 = (p["w2"] * p["s2"]).astype(jnp.bfloat16)
        y = jnp.maximum(_ref_conv(x, w1, stride, pad) + b(p["b1"]), 0.0)
        if p["use_sc"]:
            wsc = (p["wsc"] * p["ssc"]).astype(jnp.bfloat16)
            sc = _ref_conv(x, wsc, stride, 0) + b(p["bsc"])
        else:
            sc = x.astype(jnp.bfloat16).astype(jnp.float32)
        out = jnp.maximum(_ref_conv(y, w2, 1, pad) + b(p["b2"]) + sc, 0.0)
        x = out.astype(jnp.bfloat16)   # mirror the kernel's bf16 inter-block storage
    return x.astype(jnp.float32)


if __name__ == "__main__":
    key = jax.random.PRNGKey(0)
    kx, kp = jax.random.split(key)

    # CandBasicBlock(in_channels=4, out_channels=8, kernel_size=3, stride=2, num_conv=2)
    in_c, out_c, ksize, stride, num_conv = 4, 8, 3, 2, 2
    x = jax.random.normal(kx, (2, in_c, 16, 16), jnp.float32)   # NCHW like PyTorch

    params = init_cand_basic_block(kp, in_c, out_c, ksize, stride, num_conv)

    out = cand_basic_block_forward(x, params, stride)
    out = jax.block_until_ready(out)

    ref = _ref_forward(x, params, stride)
    assert out.shape == ref.shape, (out.shape, ref.shape)
    assert jnp.allclose(out, ref, atol=5e-3, rtol=5e-3), "mismatch vs JAX reference"

    print("KERNEL_OK")
</pallas_src>

<mosaic_0001>
module attributes {stable_mosaic.version = 11 : i64} {
  func.func @_basic_block_kernel(%arg0: i32, %arg1: memref<1x36x128xbf16, #tpu.memory_space<vmem>>, %arg2: memref<16x36xbf16, #tpu.memory_space<vmem>>, %arg3: memref<8x1xf32, #tpu.memory_space<vmem>>, %arg4: memref<8x72xbf16, #tpu.memory_space<vmem>>, %arg5: memref<8x1xf32, #tpu.memory_space<vmem>>, %arg6: memref<1x8x128xbf16, #tpu.memory_space<vmem>>, %arg7: memref<8x162xf32, #tpu.memory_space<vmem>>) attributes {dimension_semantics = [#tpu.dimension_semantics<parallel>], iteration_bounds = array<i64: 2>, scalar_prefetch = 0 : i64, scratch_operands = 1 : i64, tpu.core_type = #tpu.core_type<tc>, window_params = [{transform_indices = @transform_0, window_bounds = array<i64: 1, 36, 128>}, {pipeline_mode = #tpu.pipeline_mode<synchronous>, transform_indices = @transform_1, window_bounds = array<i64: 16, 36>}, {pipeline_mode = #tpu.pipeline_mode<synchronous>, transform_indices = @transform_2, window_bounds = array<i64: 8, 1>}, {pipeline_mode = #tpu.pipeline_mode<synchronous>, transform_indices = @transform_3, window_bounds = array<i64: 8, 72>}, {pipeline_mode = #tpu.pipeline_mode<synchronous>, transform_indices = @transform_4, window_bounds = array<i64: 8, 1>}, {transform_indices = @transform_5, window_bounds = array<i64: 1, 8, 128>}]} {
    %c0 = arith.constant 0 : index
    %c0_0 = arith.constant 0 : index
    %0 = vector.load %arg2[%c0, %c0_0] : memref<16x36xbf16, #tpu.memory_space<vmem>>, vector<16x36xbf16>
    %c0_1 = arith.constant 0 : index
    %c0_2 = arith.constant 0 : index
    %c0_3 = arith.constant 0 : index
    %1 = vector.load %arg1[%c0_1, %c0_2, %c0_3] : memref<1x36x128xbf16, #tpu.memory_space<vmem>>, vector<1x36x128xbf16>
    %2 = vector.shape_cast %1 : vector<1x36x128xbf16> to vector<36x128xbf16>
    %cst = arith.constant dense<0.000000e+00> : vector<16x128xf32>
    %3 = tpu.matmul %0, %2, %cst {dimension_numbers = #tpu.dot_dimension_numbers<[1], [0], [0], [1], [0, 0, 1, 1], [], []>} : vector<16x36xbf16>, vector<36x128xbf16>, vector<16x128xf32> -> vector<16x128xf32>
    %4 = vector.extract_strided_slice %3 {offsets = [0, 0], sizes = [8, 128], strides = [1, 1]} : vector<16x128xf32> to vector<8x128xf32>
    %c0_4 = arith.constant 0 : index
    %c0_5 = arith.constant 0 : index
    %5 = vector.load %arg3[%c0_4, %c0_5] : memref<8x1xf32, #tpu.memory_space<vmem>>, vector<8x1xf32>
    %6 = vector.broadcast %5 : vector<8x1xf32> to vector<8x128xf32>
    %7 = arith.addf %4, %6 : vector<8x128xf32>
    %cst_6 = arith.constant 0.000000e+00 : f32
    %8 = vector.broadcast %cst_6 : f32 to vector<8x128xf32>
    %9 = arith.maximumf %7, %8 : vector<8x128xf32>
    %10 = vector.extract_strided_slice %3 {offsets = [8, 0], sizes = [8, 128], strides = [1, 1]} : vector<16x128xf32> to vector<8x128xf32>
    %c0_7 = arith.constant 0 : index
    %c0_8 = arith.constant 0 : index
    %11 = vector.load %arg5[%c0_7, %c0_8] : memref<8x1xf32, #tpu.memory_space<vmem>>, vector<8x1xf32>
    %12 = vector.broadcast %11 : vector<8x1xf32> to vector<8x128xf32>
    %13 = arith.addf %10, %12 : vector<8x128xf32>
    %14 = tpu.iota {dimensions = array<i32: 1>} : vector<8x128xi32>
    %c16_i32 = arith.constant 16 : i32
    %c0_i32 = arith.constant 0 : i32
    %15 = arith.cmpi eq, %c16_i32, %c0_i32 : i32
    %c1_i32 = arith.constant 1 : i32
    %16 = arith.select %15, %c1_i32, %c16_i32 : i32
    %17 = vector.broadcast %16 : i32 to vector<8x128xi32>
    %18 = arith.remsi %14, %17 : vector<8x128xi32>
    %c0_i32_9 = arith.constant 0 : i32
    %19 = vector.broadcast %c0_i32_9 : i32 to vector<8x128xi32>
    %20 = arith.cmpi ne, %18, %19 : vector<8x128xi32>
    %c0_i32_10 = arith.constant 0 : i32
    %21 = vector.broadcast %c0_i32_10 : i32 to vector<8x128xi32>
    %22 = arith.cmpi slt, %18, %21 : vector<8x128xi32>
    %c0_i32_11 = arith.constant 0 : i32
    %23 = arith.cmpi slt, %16, %c0_i32_11 : i32
    %24 = vector.broadcast %23 : i1 to vector<8x128xi1>
    %25 = vector.broadcast %24 : vector<8x128xi1> to vector<8x128xi1>
    %26 = arith.xori %22, %25 : vector<8x128xi1>
    %27 = arith.andi %26, %20 : vector<8x128xi1>
    %28 = vector.broadcast %16 : i32 to vector<8x128xi32>
    %29 = arith.addi %18, %28 : vector<8x128xi32>
    %30 = arith.select %27, %29, %18 : vector<8x128xi1>, vector<8x128xi32>
    %c8_i32 = arith.constant 8 : i32
    %31 = vector.broadcast %c8_i32 : i32 to vector<8x128xi32>
    %32 = arith.cmpi slt, %30, %31 : vector<8x128xi32>
    %cst_12 = arith.constant 0.000000e+00 : f32
    %33 = vector.broadcast %cst_12 : f32 to vector<8x128xf32>
    %34 = arith.select %32, %9, %33 : vector<8x128xi1>, vector<8x128xf32>
    %cst_13 = arith.constant 0.000000e+00 : f32
    %35 = vector.broadcast %cst_13 : f32 to vector<8x17xf32>
    %c0_14 = arith.constant 0 : index
    %c0_15 = arith.constant 0 : index
    %36 = vector.load %arg7[%c0_14, %c0_15] : memref<8x162xf32, #tpu.memory_space<vmem>>, vector<8x17xf32>
    tpu.vector_store %arg7[%c0_14, %c0_15], %35 {strides = array<i32>} : memref<8x162xf32, #tpu.memory_space<vmem>>, vector<8x17xf32>,
    %cst_16 = arith.constant 0.000000e+00 : f32
    %37 = vector.broadcast %cst_16 : f32 to vector<8x17xf32>
    %c0_17 = arith.constant 0 : index
    %c145 = arith.constant 145 : index
    %38 = vector.load %arg7[%c0_17, %c145] : memref<8x162xf32, #tpu.memory_space<vmem>>, vector<8x17xf32>
    tpu.vector_store %arg7[%c0_17, %c145], %37 {strides = array<i32>} : memref<8x162xf32, #tpu.memory_space<vmem>>, vector<8x17xf32>,
    %c0_18 = arith.constant 0 : index
    %c17 = arith.constant 17 : index
    %39 = vector.load %arg7[%c0_18, %c17] : memref<8x162xf32, #tpu.memory_space<vmem>>, vector<8x128xf32>
    tpu.vector_store %arg7[%c0_18, %c17], %34 {strides = array<i32>} : memref<8x162xf32, #tpu.memory_space<vmem>>, vector<8x128xf32>,
    %c0_19 = arith.constant 0 : index
    %c0_20 = arith.constant 0 : index
    %40 = vector.load %arg7[%c0_19, %c0_20] : memref<8x162xf32, #tpu.memory_space<vmem>>, vector<8x128xf32>
    %c0_21 = arith.constant 0 : index
    %c1 = arith.constant 1 : index
    %41 = vector.load %arg7[%c0_21, %c1] : memref<8x162xf32, #tpu.memory_space<vmem>>, vector<8x128xf32>
    %c0_22 = arith.constant 0 : index
    %c2 = arith.constant 2 : index
    %42 = vector.load %arg7[%c0_22, %c2] : memref<8x162xf32, #tpu.memory_space<vmem>>, vector<8x128xf32>
    %c0_23 = arith.constant 0 : index
    %c16 = arith.constant 16 : index
    %43 = vector.load %arg7[%c0_23, %c16] : memref<8x162xf32, #tpu.memory_space<vmem>>, vector<8x128xf32>
    %c0_24 = arith.constant 0 : index
    %c17_25 = arith.constant 17 : index
    %44 = vector.load %arg7[%c0_24, %c17_25] : memref<8x162xf32, #tpu.memory_space<vmem>>, vector<8x128xf32>
    %c0_26 = arith.constant 0 : index
    %c18 = arith.constant 18 : index
    %45 = vector.load %arg7[%c0_26, %c18] : memref<8x162xf32, #tpu.memory_space<vmem>>, vector<8x128xf32>
    %c0_27 = arith.constant 0 : index
    %c32 = arith.constant 32 : index
    %46 = vector.load %arg7[%c0_27, %c32] : memref<8x162xf32, #tpu.memory_space<vmem>>, vector<8x128xf32>
    %c0_28 = arith.constant 0 : index
    %c33 = arith.constant 33 : index
    %47 = vector.load %arg7[%c0_28, %c33] : memref<8x162xf32, #tpu.memory_space<vmem>>, vector<8x128xf32>
    %c0_29 = arith.constant 0 : index
    %c34 = arith.constant 34 : index
    %48 = vector.load %arg7[%c0_29, %c34] : memref<8x162xf32, #tpu.memory_space<vmem>>, vector<8x128xf32>
    %49 = tpu.concatenate %40, %41, %42, %43, %44, %45, %46, %47, %48 in 0 : vector<8x128xf32>, vector<8x128xf32>, vector<8x128xf32>, vector<8x128xf32>, vector<8x128xf32>, vector<8x128xf32>, vector<8x128xf32>, vector<8x128xf32>, vector<8x128xf32> -> vector<72x128xf32>
    %c0_30 = arith.constant 0 : index
    %c0_31 = arith.constant 0 : index
    %50 = vector.load %arg4[%c0_30, %c0_31] : memref<8x72xbf16, #tpu.memory_space<vmem>>, vector<8x72xbf16>
    %51 = arith.truncf %49 : vector<72x128xf32> to vector<72x128xbf16>
    %cst_32 = arith.constant dense<0.000000e+00> : vector<8x128xf32>
    %52 = tpu.matmul %50, %51, %cst_32 {dimension_numbers = #tpu.dot_dimension_numbers<[1], [0], [0], [1], [0, 0, 1, 1], [], []>} : vector<8x72xbf16>, vector<72x128xbf16>, vector<8x128xf32> -> vector<8x128xf32>
    %53 = arith.addf %13, %52 : vector<8x128xf32>
    %cst_33 = arith.constant 0.000000e+00 : f32
    %54 = vector.broadcast %cst_33 : f32 to vector<8x128xf32>
    %55 = arith.maximumf %53, %54 : vector<8x128xf32>
    %56 = arith.truncf %55 : vector<8x128xf32> to vector<8x128xbf16>
    %c0_34 = arith.constant 0 : index
    %c0_35 = arith.constant 0 : index
    %c0_36 = arith.constant 0 : index
    %57 = vector.load %arg6[%c0_34, %c0_35, %c0_36] : memref<1x8x128xbf16, #tpu.memory_space<vmem>>, vector<1x8x128xbf16>
    %58 = vector.shape_cast %57 : vector<1x8x128xbf16> to vector<8x128xbf16>
    %59 = vector.shape_cast %56 : vector<8x128xbf16> to vector<1x8x128xbf16>
    tpu.vector_store %arg6[%c0_34, %c0_35, %c0_36], %59 {strides = array<i32>} : memref<1x8x128xbf16, #tpu.memory_space<vmem>>, vector<1x8x128xbf16>,
    return
  }
  func.func @transform_0(%arg0: i32) -> (i32, i32, i32) {
    %c0_i32 = arith.constant 0 : i32
    %c0_i32_0 = arith.constant 0 : i32
    %c0_i32_1 = arith.constant 0 : i32
    return %arg0, %c0_i32, %c0_i32_0 : i32, i32, i32
  }
  func.func @transform_1(%arg0: i32) -> (i32, i32) {
    %c0_i32 = arith.constant 0 : i32
    %c0_i32_0 = arith.constant 0 : i32
    %c0_i32_1 = arith.constant 0 : i32
    return %c0_i32, %c0_i32_0 : i32, i32
  }
  func.func @transform_2(%arg0: i32) -> (i32, i32) {
    %c0_i32 = arith.constant 0 : i32
    %c0_i32_0 = arith.constant 0 : i32
    %c0_i32_1 = arith.constant 0 : i32
    return %c0_i32, %c0_i32_0 : i32, i32
  }
  func.func @transform_3(%arg0: i32) -> (i32, i32) {
    %c0_i32 = arith.constant 0 : i32
    %c0_i32_0 = arith.constant 0 : i32
    %c0_i32_1 = arith.constant 0 : i32
    return %c0_i32, %c0_i32_0 : i32, i32
  }
  func.func @transform_4(%arg0: i32) -> (i32, i32) {
    %c0_i32 = arith.constant 0 : i32
    %c0_i32_0 = arith.constant 0 : i32
    %c0_i32_1 = arith.constant 0 : i32
    return %c0_i32, %c0_i32_0 : i32, i32
  }
  func.func @transform_5(%arg0: i32) -> (i32, i32, i32) {
    %c0_i32 = arith.constant 0 : i32
    %c0_i32_0 = arith.constant 0 : i32
    %c0_i32_1 = arith.constant 0 : i32
    return %arg0, %c0_i32, %c0_i32_0 : i32, i32, i32
  }
}

</mosaic_0001>

<bundles_post_ra>
// kernel: tpu_custom_call.1
= control target key start
LH: loop header
LB: loop body
LE: loop exit
PB: predicated region body
PF: predicated region fallthrough
CT: control target
= control target key end

     0   :  { %10 = vsyncpa [#allocation4], 0  ;;  %s916_s0 = inlined_call_operand.vmem [shape: bf16[2,36,128], index: 0, kind: input, shape index: {}]   ;;  %s917_s1 = inlined_call_operand.vmem [shape: bf16[16,36], index: 1, kind: input, shape index: {}]   ;;  %s918_s2 = inlined_call_operand.vmem [shape: f32[8,1], index: 2, kind: input, shape index: {}]   ;;  %s919_s3 = inlined_call_operand.vmem [shape: bf16[8,72], index: 3, kind: input, shape index: {}]   ;;  %s920_s4 = inlined_call_operand.vmem [shape: f32[8,1], index: 4, kind: input, shape index: {}]   ;;  %s921_s5 = inlined_call_operand.hbm [shape: bf16[2,8,128], index: 5, kind: output, shape index: {}]  }
   0x1   :  { %12 = vsyncpa [#allocation4 + $0x1], 0  ;;  %s787_s18 = smov 0   ;;  %s789_s19 = smov 0  }
   0x2   :  { %s791_s20 = smov 0   ;;  %s793_s21 = smov 0  }
   0x3 LB: > { %s808_s22 = sadd.s32 4294967295, %s742_s21   ;;  %s533_s23 = sadd.s32 4294967294, %s742_s21   ;;  %s742_s21 = sphi %s793_s21, %s927_s21   ;;  %s738_s20 = sphi %s791_s20, %s926_s20   ;;  %s734_s19 = sphi %s789_s19, %s925_s19   ;;  %s730_s18 = sphi %s787_s18, %s924_s18  }
   0x4   : > { %s812_s24 = sadd.s32 1, %s742_s21   ;;  %s135_s25 = sadd.s32 1, %s738_s20 }
   0x5   : > { %s132_s26 = ssub.s32 %s742_s21, %s812_s24  ;;  %p145_p0 = scmp.ne.s32.totalorder %s738_s20, %s734_s19 }
   0x6   : > { %p133_p1 = scmp.eq.s32.totalorder %s132_s26, 0  ;;  %p146_p2 = scmp.eq.s32.totalorder %s808_s22, 1 }
   0x7   : > { %p151_p3 = scmp.ne.s32.totalorder %s734_s19, %s730_s18  ;;  %p152_p4 = scmp.eq.s32.totalorder %s533_s23, 1 }
   0x8   : > { %s823_s27 = scalar_select %p133_p1, %s738_s20, %s135_s25  }
   0x9   : > { %p825_p5 = por %p146_p2, %p145_p0  ;;  %p829_p6 = por %p152_p4, %p151_p3 }
   0xa   : > { %p536_p7 = scmp.ge.s32.totalorder %s742_s21, 1  ;;  %p190_p8 = scmp.lt.s32.totalorder %s742_s21, 3 }
   0xc   : > { %p191_p9 = pnand %p536_p7, %p190_p8 }
   0xd   : > { %p218_p10 = scmp.lt.s32.totalorder (!%p191_p9), %s808_s22, 1  ;;  %v744_v0 = vmov (!%p191_p9), 0.0   ;;  %vm745_vm0 = vmmov (!%p191_p9), 0   ;;  %v300_v1 = vld [vmem:[%s918_s2] sm:$0xff] (!%p191_p9)  ;;  %v746_v2 = vmov (!%p191_p9), 0   ;;  %vm255_vm1 = vcmask (!%p191_p9), 1041408  }
   0xe   : > { %194 = sbr.rel (%p191_p9) target bundleno = 753 (0x2f1), region = 40  ;;  %559 = vmatprep.subr.bf16.mxu0 (!%p191_p9), %v744_v0  ;;  %565 = vmatprep.mubr.msk.bf16.mxu0 (!%p191_p9), %vm745_vm0, %v744_v0  ;;  %v679_v7 = vld [vmem:[%s917_s1] sm:$0xff] (!%p191_p9)   ;;  %vm251_vm2 = vcmask (!%p191_p9), 293888   ;;  %vm331_vm3 = vcmask (!%p191_p9), 138240   ;;  %vm333_vm4 = vcmask (!%p191_p9), 277640   ;;  %v315_v8 = vlaneseq (!%p191_p9)  ;;  %s747_s14 = smov (!%p191_p9), 17  }
   0xf   : > { %635 = vset.pattern.permute.xlu0 (!%p191_p9), %v746_v2  ;;  %569 = vmatprep.subr.bf16.mxu1 (!%p191_p9), %v744_v0  ;;  %332 = vst.msk [vmem:[#allocation2] sm:$0xff] (!%p191_p9), %vm331_vm3, %v744_v0  ;;  %vm339_vm6 = vcmask (!%p191_p9), 1047688   ;;  %s748_s15 = smov (!%p191_p9), 112   ;;  %s749_s16 = smov (!%p191_p9), 127   ;;  %v308_v23 = vld [vmem:[%s920_s4] sm:$0xff] (!%p191_p9)  ;;  %vm350_vm7 = vcmask (!%p191_p9), 1039360  }
  0x10   : > { %303 = vperm.xlu0 (!%p191_p9), %635, %v300_v1   ;;  %579 = vmatprep.mubr.msk.bf16.mxu1 (!%p191_p9), %vm745_vm0, %v744_v0  ;;  %334 = vst.msk [vmem:[#allocation2 + $0x8] sm:$0xff] (!%p191_p9), %vm333_vm4, %v744_v0  ;;  %v316_v9 = vand.u32 (!%p191_p9), 127, %v315_v8  ;;  %s750_s17 = smov (!%p191_p9), 110   ;;  %s751_s23 = smov (!%p191_p9), 126   ;;  %vm357_vm8 = vcmask (!%p191_p9), 1031168   ;;  %vm364_vm9 = vcmask (!%p191_p9), 916480  }
  0x11   : > { %s752_s25 = smov (!%p191_p9), 95   ;;  %s753_s26 = smov (!%p191_p9), 111   ;;  %vm371_vm10 = vcmask (!%p191_p9), 908288   ;;  %vm378_vm11 = vcmask (!%p191_p9), 900096   ;;  %vm385_vm12 = vcmask (!%p191_p9), 785408   ;;  %vm392_vm13 = vcmask (!%p191_p9), 777216  }
  0x12   : > { %v321_v11 = vand.u32 (!%p191_p9), 15, %v316_v9  ;;  %vm399_vm14 = vcmask (!%p191_p9), 769024   ;;  %vm412_vm15 = vcmask (!%p191_p9), 1043456   ;;  %v402_v62 = vld [vmem:[%s919_s3] sm:$0xf] (!%p191_p9)  ;;  %vm408_vm0 = vcmask (!%p191_p9), 588800  }
  0x13   : > { %s546_s13 = sshll.u32 (!%p191_p9), %s808_s22, 6 }
  0x14   : > { %vm329_vm5 = vcmp.lt.s32.totalorder (!%p191_p9), %v321_v11, 8 }
  0x15   : > { %s219_s7 = scalar_select %p218_p10, %s808_s22, 1 }
  0x16   : > { %s756_s22 = smov [#allocation3]  }
  0x17   : > { %s583_s8 = smul.u32 20, %s219_s7  ;;  %s754_s7 = smov 96  }
  0x18   : > { %s684_s30 = sshll.u32 %s756_s22, 4  ;;  %s685_s30 = int_to_ptr.vmem [resolvable:$false] %s684_s30 }
  0x19   : > { %s222_s11 = scalar_lea.vmem %s916_s0, %s583_s8  ;;  %s755_s8 = smov 94  }
  0x1a   : > { %v676_v3 = vld [vmem:[%s222_s11] sm:$0xff]   ;;  %v677_v4 = vld [vmem:[%s222_s11 + $0x8] sm:$0xff]   ;;  %v678_v5 = vld [vmem:[%s222_s11 + $0x10] ss:$0 sps:$4 sm:$0x33]   ;;  %s215_s11 = sand.u32 1, %s734_s19  }
  0x1b   : > { %560 = vmatpush3.bf16.msra.mxu0 %v676_v3  ;;  %v257_v6 = vsel %vm255_vm1, %v678_v5, 0  ;;  %s537_s12 = sshll.u32 %s215_s11, 2  ;;  %s686_s6 = scalar_lea.vmem %s685_s30, 128 }
  0x1c   : > { %561 = vmatprep.subr.bf16.mxu0 %v744_v0 }
  0x1f   : > { %562 = vmatpush3.bf16.msra.mxu0 %v677_v4 }
  0x20   : > { %563 = vmatprep.subr.bf16.mxu0 %v744_v0 }
  0x23   : > { %564 = vmatpush3.bf16.msra.mxu0 %v257_v6 }
  0x26   : > { %566 = vmatmul.mubr.msk.bf16.vlgmr.msra.gmra.mrb[0].mxu0 %vm251_vm2, %v679_v7 }
  0x8f   : > { %v304_v10 = vpop.permute.xlu0 %303 }
  0xf9   : > { %v293_v12 = vpop.f32.mrb[0].mxu0 }
  0xfa   : > { %v306_v13 = vadd.f32 %v304_v10, %v293_v12  ;;  %v567_v14 = vpop.f32.mrb[1].mxu0 }
  0xfb   : > { %v855_v15 = vpop.f32.mrb[2].mxu0 }
  0xfc   : > { %v307_v16 = vmax.f32 %v306_v13, 0.0  ;;  %v568_v17 = vpop.f32.mrb[3].mxu0 }
  0xfe   : > { %v330_v18 = vsel %vm329_vm5, %v307_v16, 0.0 }
  0xff   : > { %336 = vrot.lane.b32.xlu0 %v330_v18, %s747_s14  ;;  %s217_s14 = scalar_lea.vmem [#allocation3], %s537_s12 }
 0x171   : > { %v337_v19 = vpop.permute.xlu0 %336 }
 0x172   : > { %340 = vst.msk [vmem:[#allocation2] sm:$0xff] %vm339_vm6, %v337_v19 }
 0x173   : > { %341 = vst.msk [vmem:[#allocation2 + $0x8] sm:$0xff] %vm331_vm3, %v337_v19 }
 0x179   : > { %v342_v20 = vld [vmem:[#allocation2] sm:$0xff] }
 0x17a   : > { %v343_v21 = vld [vmem:[#allocation2 + $0x8] sm:$0xff] }
 0x17b   : > { %v646_v22 = vpack.i.bf16 %v343_v21, %v342_v20 }
 0x17d   : > { %647 = vrot.lane.b32.xlu0 %v646_v22, %s748_s15  ;;  %637 = vrot.lane.b32.xlu1 %v646_v22, %s749_s16  ;;  %s474_s15 = sshll.u32 %s217_s14, 4  ;;  %s876_s15 = int_to_ptr.vmem [resolvable:$true] %s474_s15 }
 0x17e   : > { %p687_p0 = scmp.lt.s32.totalorder %s876_s15, %s685_s30 }
 0x181   : > { %657 = vrot.lane.b32.xlu0 %v646_v22, %s750_s17  ;;  %642 = vrot.lane.b32.xlu1 %v646_v22, %s751_s23  ;;  %s874_s23 = scalar_lea.hbm %s921_s5, %s546_s13 }
 0x185   : > { %667 = vrot.lane.b32.xlu0 %v646_v22, %s752_s25  ;;  %652 = vrot.lane.b32.xlu1 %v646_v22, %s753_s26  ;;  %s461_s25 = scalar_lea.sflag [#allocation4], %s215_s11  ;;  %s680_s26 = scalar_lea.vmem %s876_s15, 64 }
 0x186   : > { %p681_p11 = scmp.ne.s32.totalorder %s876_s15, %s680_s26  ;;  %p688_p1 = scmp.lt.s32.totalorder %s686_s6, %s680_s26 }
 0x188   : > { %p682_p12 = pnand %p681_p11, %p825_p5  ;;  %p689_p2 = por %p688_p1, %p687_p0 }
 0x189   : > { %311 = vperm.xlu0 %635, %v308_v23   ;;  %662 = vrot.lane.b32.xlu1 %v646_v22, %s754_s7 }
 0x18a   : > { %p683_p13 = pneg %p682_p12 }
 0x18c   : > { %p690_p3 = pnand %p689_p2, %p683_p13 }
 0x18d   : > { %672 = vrot.lane.b32.xlu1 %v646_v22, %s755_s8 }
 0x1ef   : > { %v648_v24 = vpop.permute.xlu0 %647  ;;  %v638_v25 = vpop.permute.xlu1 %637 }
 0x1f0   : > { %v640_v26 = vunpack.i.h.bf16 %v638_v25  ;;  %v639_v27 = vunpack.i.l.bf16 %v638_v25  ;;  %v650_v28 = vunpack.i.h.bf16 %v648_v24  ;;  %v649_v29 = vunpack.i.l.bf16 %v648_v24 }
 0x1f2   : > { %v351_v30 = vsel %vm350_vm7, %v639_v27, %v640_v26  ;;  %v365_v39 = vsel %vm364_vm9, %v649_v29, %v650_v28 }
 0x1f3   : > { %v658_v31 = vpop.permute.xlu0 %657  ;;  %v643_v32 = vpop.permute.xlu1 %642  ;;  %v403_v33 = vpack.c.bf16 %v351_v30, %v342_v20 }
 0x1f4   : > { %v645_v34 = vunpack.i.h.bf16 %v643_v32  ;;  %v644_v35 = vunpack.i.l.bf16 %v643_v32  ;;  %v660_v36 = vunpack.i.h.bf16 %v658_v31  ;;  %v659_v37 = vunpack.i.l.bf16 %v658_v31 }
 0x1f5   : > { %570 = vmatpush3.bf16.msra.mxu1 %v403_v33 }
 0x1f6   : > { %571 = vmatprep.subr.bf16.mxu1 %v744_v0  ;;  %v358_v38 = vsel %vm357_vm8, %v644_v35, %v645_v34  ;;  %v379_v48 = vsel %vm378_vm11, %v659_v37, %v660_v36 }
 0x1f7   : > { %v668_v40 = vpop.permute.xlu0 %667  ;;  %v653_v41 = vpop.permute.xlu1 %652  ;;  %v404_v42 = vpack.c.bf16 %v365_v39, %v358_v38 }
 0x1f8   : > { %v655_v43 = vunpack.i.h.bf16 %v653_v41  ;;  %v654_v44 = vunpack.i.l.bf16 %v653_v41  ;;  %v670_v45 = vunpack.i.h.bf16 %v668_v40  ;;  %v669_v46 = vunpack.i.l.bf16 %v668_v40 }
 0x1f9   : > { %572 = vmatpush3.bf16.msra.mxu1 %v404_v42 }
 0x1fa   : > { %573 = vmatprep.subr.bf16.mxu1 %v744_v0  ;;  %v372_v47 = vsel %vm371_vm10, %v654_v44, %v655_v43  ;;  %v393_v54 = vsel %vm392_vm13, %v669_v46, %v670_v45 }
 0x1fb   : > { %v663_v49 = vpop.permute.xlu1 %662  ;;  %v405_v50 = vpack.c.bf16 %v379_v48, %v372_v47 }
 0x1fc   : > { %v665_v51 = vunpack.i.h.bf16 %v663_v49  ;;  %v664_v52 = vunpack.i.l.bf16 %v663_v49 }
 0x1fd   : > { %574 = vmatpush3.bf16.msra.mxu1 %v405_v50 }
 0x1fe   : > { %575 = vmatprep.subr.bf16.mxu1 %v744_v0  ;;  %v386_v53 = vsel %vm385_vm12, %v664_v52, %v665_v51 }
 0x1ff   : > { %v673_v55 = vpop.permute.xlu1 %672  ;;  %v406_v56 = vpack.c.bf16 %v393_v54, %v386_v53 }
 0x200   : > { %v675_v57 = vunpack.i.h.bf16 %v673_v55  ;;  %v674_v58 = vunpack.i.l.bf16 %v673_v55 }
 0x201   : > { %576 = vmatpush3.bf16.msra.mxu1 %v406_v56 }
 0x202   : > { %577 = vmatprep.subr.bf16.mxu1 %v744_v0  ;;  %v400_v59 = vsel %vm399_vm14, %v674_v58, %v675_v57 }
 0x203   : > { %v407_v60 = vpack.c.bf16 %v400_v59, %v400_v59 }
 0x205   : > { %v414_v61 = vsel %vm412_vm15, %v407_v60, 0 }
 0x206   : > { %578 = vmatpush3.bf16.msra.mxu1 %v414_v61 }
 0x208   : > { %v312_v63 = vpop.permute.xlu0 %311 }
 0x209   : > { %580 = vmatmul.mubr.msk.bf16.vlgmr.msra.gmra.mrb[0].mxu1 %vm408_vm0, %v402_v62  ;;  %v314_v1 = vadd.f32 %v312_v63, %v855_v15 }
 0x2dc   : > { %v450_v2 = vpop.f32.mrb[0].mxu1 }
 0x2dd   : > { %v456_v0 = vadd.f32 %v450_v2, %v314_v1  ;;  %v581_v3 = vpop.f32.mrb[1].mxu1 }
 0x2de   : > { %v453_v4 = vpop.f32.mrb[2].mxu1 }
 0x2df   : > { %v457_v5 = vmax.f32 %v456_v0, 0.0  ;;  %v582_v6 = vpop.f32.mrb[3].mxu1 }
 0x2e1   : > { %v458_v7 = vpack.c.bf16 %v457_v5, %v457_v5 }
 0x2e3   : > { %459 = vst [vmem:[%s217_s14] sm:$0xf] %v458_v7 }
 0x2e4   : > { %693 = shalt.err (!%p690_p3)
}
 0x2e5   : > { %s694_s7 = scalar_lea.hbm %s874_s23, 64  ;;  %s698_s10 = scalar_lea.hbm %s921_s5, 128 }
 0x2e6   : > { %p695_p4 = scmp.ne.s32.totalorder %s874_s23, %s694_s7  ;;  %p699_p9 = scmp.lt.u32.totalorder %s874_s23, %s921_s5 }
 0x2e7   : > { %p700_p10 = scmp.lt.u32.totalorder %s698_s10, %s694_s7  ;;  %p702_p12 = scmp.lt.u32.totalorder %s694_s7, %s874_s23 }
 0x2e8   : > { %p696_p7 = pnand %p695_p4, %p825_p5 }
 0x2e9   : > { %p701_p11 = por %p700_p10, %p699_p9 }
 0x2ea   : > { %p697_p8 = pneg %p696_p7 }
 0x2eb   : > { %p703_p13 = por %p702_p12, %p701_p11 }
 0x2ed   : > { %p704_p0 = pnand %p703_p13, %p697_p8 }
 0x2ef   : > { %707 = shalt.err (!%p704_p0)
}
 0x2f0   : > { %584 = dma.vmem_to_hbm [thread:$0]  (%p825_p5), %s876_s15, 64, %s874_s23, %s461_s25  }
 0x2f1 PF: > { %p590_p1 = scmp.ge.s32.totalorder %s742_s21, 2  ;;  %s486_s13 = sand.u32 1, %s730_s18  }
 0x2f2   : > { %s487_s14 = scalar_lea.sflag [#allocation4], %s486_s13 }
 0x2f3   : > { %p587_p2 = pnand %p590_p1, %p829_p6 }
 0x2f5   : > { %725 = dma.done.wait (!%p587_p2), %s487_s14, 64  }
 0x2f6   : > { %727 = vsyncadd (!%p587_p2), %s487_s14, 4294967232  ;;  %p15_p3 = scmp.ge.s32.totalorder %s812_s24, 4   ;;  %s924_s18 = smov %s734_s19 }
 0x2f7   : > { %s925_s19 = smov %s738_s20  ;;  %s926_s20 = smov %s823_s27 }
 0x2f8   : > { %s927_s21 = smov %s812_s24  ;;  %17 = sbr.rel (!%p15_p3) target bundleno = 3 (0x3), region = 75 }
 0x2ff   :  { %492 = vsyncpa [#allocation4], 1 }
 0x300   :  { %494 = vsyncpa [#allocation4 + $0x1], 1 }

</bundles_post_ra>
